<compile_context>
chip_gen: v6e
topology: v6e:2x2x1
jax: 0.10.0
libtpu: 0.0.40
codegen_flags: <defaults>
</compile_context>

<pallas_src>
import jax
import jax.numpy as jnp
from jax.experimental import pallas as pl
from jax.experimental.pallas import tpu as pltpu

LANE = 128
MAX_TB = 4096  # per-tile VMEM stays well under limits on every generation


def _round_up(n, m):
    return ((n + m - 1) // m) * m


# --------------------------------------------------------------------------
# Kernel
# --------------------------------------------------------------------------
def qnet_kernel(x_ref, w1_ref, b1_ref, w2_ref, b2_ref, out_ref):
    # fc1: (TB, state) @ (state, 128) on the MXU, f32 accumulate.
    x = x_ref[...]                                   # already bf16
    h = jnp.dot(x, w1_ref[...], preferred_element_type=jnp.float32) + b1_ref[...]
    h = jnp.tanh(h)                                  # f32 bias + tanh (v5e-safe)
    # fc2: (TB, 128) @ (128, action); store only the real action columns.
    q = jnp.dot(h.astype(jnp.bfloat16), w2_ref[...],
                preferred_element_type=jnp.float32) + b2_ref[...]
    out_ref[...] = q


# --------------------------------------------------------------------------
# One-time parameter prep (keep OUT of the hot path)
# --------------------------------------------------------------------------
def prepare_params(w1, b1, w2, b2):
    """w1: (state, hidden); b1: (1, hidden); w2: (hidden, action); b2: (1, action).
    Pads hidden up to 128 lanes (zeros -> math is exact) and casts weights to
    bf16 for the MXU.  Returns a tuple to pass to qnet_forward."""
    state, hidden = w1.shape
    action = w2.shape[1]
    Hp = _round_up(max(hidden, LANE), LANE)

    w1p = jnp.pad(w1, ((0, 0), (0, Hp - hidden))).astype(jnp.bfloat16)
    b1p = jnp.pad(b1.reshape(1, hidden), ((0, 0), (0, Hp - hidden))).astype(jnp.float32)
    w2p = jnp.pad(w2, ((0, Hp - hidden), (0, 0))).astype(jnp.bfloat16)
    b2p = b2.reshape(1, action).astype(jnp.float32)
    return w1p, b1p, w2p, b2p


# --------------------------------------------------------------------------
# Hot-path forward
# --------------------------------------------------------------------------
def qnet_forward(x, params, *, num_batch_tiles=1):
    """x: (B, state); params from prepare_params(). Returns (B, action) f32.
    num_batch_tiles=1 for v5e/v6e (single TensorCore); use 2 on v7x so the
    'parallel' batch axis is sharded across both TensorCores."""
    w1p, b1p, w2p, b2p = params
    B, state = x.shape
    action = w2p.shape[1]

    # Batch tiling sized to the batch (multiple of 8 sublanes, capped).
    B8 = _round_up(B, 8)
    n_tiles = max(num_batch_tiles, pl.cdiv(B8, MAX_TB))
    TB = _round_up(pl.cdiv(B8, n_tiles), 8)
    grid_n = pl.cdiv(B8, TB)
    Bp = grid_n * TB

    xp = x.astype(jnp.bfloat16)
    if Bp != B:
        xp = jnp.pad(xp, ((0, Bp - B), (0, 0)))

    resident = lambda shape: pl.BlockSpec(shape, lambda i: (0, 0))

    out = pl.pallas_call(
        qnet_kernel,
        out_shape=jax.ShapeDtypeStruct((Bp, action), jnp.float32),
        grid=(grid_n,),
        in_specs=[
            pl.BlockSpec((TB, state), lambda i: (i, 0)),   # x: tiled over batch
            resident(w1p.shape),                           # weights stay VMEM-resident
            resident(b1p.shape),
            resident(w2p.shape),
            resident(b2p.shape),
        ],
        out_specs=pl.BlockSpec((TB, action), lambda i: (i, 0)),
        compiler_params=pltpu.CompilerParams(
            dimension_semantics=("parallel",)),
    )(xp, w1p, b1p, w2p, b2p)

    return out if Bp == B else out[:B]


# --------------------------------------------------------------------------
# Init / reference
# --------------------------------------------------------------------------
def init_params(key, state_size, hidden_size, action_size):
    """Deterministic init mimicking nn.Linear default (U(-1/sqrt(fan_in), +))."""
    k1, k2, k3, k4 = jax.random.split(key, 4)
    lim1 = 1.0 / jnp.sqrt(jnp.float32(state_size))
    lim2 = 1.0 / jnp.sqrt(jnp.float32(hidden_size))
    w1 = jax.random.uniform(k1, (state_size, hidden_size), jnp.float32, -lim1, lim1)
    b1 = jax.random.uniform(k2, (1, hidden_size), jnp.float32, -lim1, lim1)
    w2 = jax.random.uniform(k3, (hidden_size, action_size), jnp.float32, -lim2, lim2)
    b2 = jax.random.uniform(k4, (1, action_size), jnp.float32, -lim2, lim2)
    return w1, b1, w2, b2


def _reference(x, w1, b1, w2, b2):
    # Same math with the same bf16 MXU operands / f32 accumulation.
    h = jnp.tanh(jnp.dot(x.astype(jnp.bfloat16), w1.astype(jnp.bfloat16),
                         preferred_element_type=jnp.float32) + b1)
    return jnp.dot(h.astype(jnp.bfloat16), w2.astype(jnp.bfloat16),
                   preferred_element_type=jnp.float32) + b2


if __name__ == "__main__":
    # CartPole-like sizes: state=4, action=2, hidden=32.
    state_size, hidden_size, action_size = 4, 32, 2

    key = jax.random.PRNGKey(0)
    kx, kp, kx2 = jax.random.split(key, 3)
    w1, b1, w2, b2 = init_params(kp, state_size, hidden_size, action_size)
    params = prepare_params(w1, b1, w2, b2)   # one-time: out of the hot path

    # Small batch (single grid step, no padding).
    x_small = jax.random.normal(kx, (8, state_size), jnp.float32)
    q_small = qnet_forward(x_small, params)
    jax.block_until_ready(q_small)
    assert q_small.shape == (8, action_size)
    assert jnp.allclose(q_small, _reference(x_small, w1, b1, w2, b2),
                        atol=1e-4, rtol=1e-4)
    # Sanity vs full-f32 math (bf16 MXU operands -> intentionally looser tol).
    q_f32 = jnp.tanh(x_small @ w1 + b1) @ w2 + b2
    assert jnp.allclose(q_small, q_f32, atol=5e-2, rtol=5e-2)

    # Larger batch: single 600-row tile (no dead rows) on 1-TC chips.
    x_big = jax.random.normal(kx2, (600, state_size), jnp.float32)
    q_big = qnet_forward(x_big, params)
    jax.block_until_ready(q_big)
    assert q_big.shape == (600, action_size)
    assert jnp.allclose(q_big, _reference(x_big, w1, b1, w2, b2),
                        atol=1e-4, rtol=1e-4)

    # v7x-style: 2 parallel batch tiles (exercises multi-step grid + 8-row tail pad).
    q_big2 = qnet_forward(x_big, params, num_batch_tiles=2)
    jax.block_until_ready(q_big2)
    assert q_big2.shape == (600, action_size)
    assert jnp.allclose(q_big2, _reference(x_big, w1, b1, w2, b2),
                        atol=1e-4, rtol=1e-4)

    print("KERNEL_OK")
</pallas_src>

<mosaic_0001>
module attributes {stable_mosaic.version = 11 : i64} {
  func.func @qnet_kernel(%arg0: i32, %arg1: memref<8x4xbf16, #tpu.memory_space<vmem>>, %arg2: memref<4x128xbf16, #tpu.memory_space<vmem>>, %arg3: memref<1x128xf32, #tpu.memory_space<vmem>>, %arg4: memref<128x2xbf16, #tpu.memory_space<vmem>>, %arg5: memref<1x2xf32, #tpu.memory_space<vmem>>, %arg6: memref<8x2xf32, #tpu.memory_space<vmem>>) attributes {dimension_semantics = [#tpu.dimension_semantics<parallel>], iteration_bounds = array<i64: 1>, scalar_prefetch = 0 : i64, scratch_operands = 0 : i64, tpu.core_type = #tpu.core_type<tc>, window_params = [{transform_indices = @transform_0, window_bounds = array<i64: 8, 4>}, {pipeline_mode = #tpu.pipeline_mode<synchronous>, transform_indices = @transform_1, window_bounds = array<i64: 4, 128>}, {pipeline_mode = #tpu.pipeline_mode<synchronous>, transform_indices = @transform_2, window_bounds = array<i64: 1, 128>}, {pipeline_mode = #tpu.pipeline_mode<synchronous>, transform_indices = @transform_3, window_bounds = array<i64: 128, 2>}, {pipeline_mode = #tpu.pipeline_mode<synchronous>, transform_indices = @transform_4, window_bounds = array<i64: 1, 2>}, {transform_indices = @transform_5, window_bounds = array<i64: 8, 2>}]} {
    %c0 = arith.constant 0 : index
    %c0_0 = arith.constant 0 : index
    %0 = vector.load %arg1[%c0, %c0_0] : memref<8x4xbf16, #tpu.memory_space<vmem>>, vector<8x4xbf16>
    %c0_1 = arith.constant 0 : index
    %c0_2 = arith.constant 0 : index
    %1 = vector.load %arg2[%c0_1, %c0_2] : memref<4x128xbf16, #tpu.memory_space<vmem>>, vector<4x128xbf16>
    %cst = arith.constant dense<0.000000e+00> : vector<8x128xf32>
    %2 = tpu.matmul %0, %1, %cst {dimension_numbers = #tpu.dot_dimension_numbers<[1], [0], [0], [1], [0, 0, 1, 1], [], []>} : vector<8x4xbf16>, vector<4x128xbf16>, vector<8x128xf32> -> vector<8x128xf32>
    %c0_3 = arith.constant 0 : index
    %c0_4 = arith.constant 0 : index
    %3 = vector.load %arg3[%c0_3, %c0_4] : memref<1x128xf32, #tpu.memory_space<vmem>>, vector<1x128xf32>
    %4 = vector.broadcast %3 : vector<1x128xf32> to vector<8x128xf32>
    %5 = arith.addf %2, %4 : vector<8x128xf32>
    %6 = math.tanh %5 : vector<8x128xf32>
    %7 = arith.truncf %6 : vector<8x128xf32> to vector<8x128xbf16>
    %c0_5 = arith.constant 0 : index
    %c0_6 = arith.constant 0 : index
    %8 = vector.load %arg4[%c0_5, %c0_6] : memref<128x2xbf16, #tpu.memory_space<vmem>>, vector<128x2xbf16>
    %cst_7 = arith.constant dense<0.000000e+00> : vector<8x2xf32>
    %9 = tpu.matmul %7, %8, %cst_7 {dimension_numbers = #tpu.dot_dimension_numbers<[1], [0], [0], [1], [0, 0, 1, 1], [], []>} : vector<8x128xbf16>, vector<128x2xbf16>, vector<8x2xf32> -> vector<8x2xf32>
    %c0_8 = arith.constant 0 : index
    %c0_9 = arith.constant 0 : index
    %10 = vector.load %arg5[%c0_8, %c0_9] : memref<1x2xf32, #tpu.memory_space<vmem>>, vector<1x2xf32>
    %11 = vector.broadcast %10 : vector<1x2xf32> to vector<8x2xf32>
    %12 = arith.addf %9, %11 : vector<8x2xf32>
    %c0_10 = arith.constant 0 : index
    %c0_11 = arith.constant 0 : index
    %13 = vector.load %arg6[%c0_10, %c0_11] : memref<8x2xf32, #tpu.memory_space<vmem>>, vector<8x2xf32>
    tpu.vector_store %arg6[%c0_10, %c0_11], %12 {strides = array<i32>} : memref<8x2xf32, #tpu.memory_space<vmem>>, vector<8x2xf32>,
    return
  }
  func.func @transform_0(%arg0: i32) -> (i32, i32) {
    %c0_i32 = arith.constant 0 : i32
    %c0_i32_0 = arith.constant 0 : i32
    return %arg0, %c0_i32 : i32, i32
  }
  func.func @transform_1(%arg0: i32) -> (i32, i32) {
    %c0_i32 = arith.constant 0 : i32
    %c0_i32_0 = arith.constant 0 : i32
    %c0_i32_1 = arith.constant 0 : i32
    return %c0_i32, %c0_i32_0 : i32, i32
  }
  func.func @transform_2(%arg0: i32) -> (i32, i32) {
    %c0_i32 = arith.constant 0 : i32
    %c0_i32_0 = arith.constant 0 : i32
    %c0_i32_1 = arith.constant 0 : i32
    return %c0_i32, %c0_i32_0 : i32, i32
  }
  func.func @transform_3(%arg0: i32) -> (i32, i32) {
    %c0_i32 = arith.constant 0 : i32
    %c0_i32_0 = arith.constant 0 : i32
    %c0_i32_1 = arith.constant 0 : i32
    return %c0_i32, %c0_i32_0 : i32, i32
  }
  func.func @transform_4(%arg0: i32) -> (i32, i32) {
    %c0_i32 = arith.constant 0 : i32
    %c0_i32_0 = arith.constant 0 : i32
    %c0_i32_1 = arith.constant 0 : i32
    return %c0_i32, %c0_i32_0 : i32, i32
  }
  func.func @transform_5(%arg0: i32) -> (i32, i32) {
    %c0_i32 = arith.constant 0 : i32
    %c0_i32_0 = arith.constant 0 : i32
    return %arg0, %c0_i32 : i32, i32
  }
}

</mosaic_0001>

<bundles_post_ra>
// kernel: tpu_custom_call.1
= control target key start
LH: loop header
LB: loop body
LE: loop exit
PB: predicated region body
PF: predicated region fallthrough
CT: control target
= control target key end

     0   :  { %vm34_vm0 = vcmask 1041408   ;;  %v257_v0 = vmov 0.0   ;;  %vm258_vm1 = vmmov 0   ;;  %vm30_vm2 = vcmask 31744   ;;  %s328_s1 = inlined_call_operand.vmem [shape: bf16[4,128], index: 1, kind: input, shape index: {}]   ;;  %s329_s0 = inlined_call_operand.vmem [shape: bf16[8,4], index: 0, kind: input, shape index: {}]   ;;  %s330_s3 = inlined_call_operand.vmem [shape: bf16[128,2], index: 3, kind: input, shape index: {}]   ;;  %s331_s2 = inlined_call_operand.vmem [shape: f32[1,128], index: 2, kind: input, shape index: {}]   ;;  %s332_s4 = inlined_call_operand.vmem [shape: f32[1,2], index: 4, kind: input, shape index: {}]   ;;  %s333_s5 = inlined_call_operand.vmem [shape: f32[8,2], index: 5, kind: output, shape index: {}]  }
   0x1   :  { %219 = vmatprep.subr.bf16.mxu0 %v257_v0  ;;  %v22_v1 = vld [vmem:[%s328_s1] sm:$0x3]  ;;  %221 = vmatprep.mubr.msk.bf16.mxu0 %vm258_vm1, %v257_v0  ;;  %v247_v3 = vld [vmem:[%s330_s3 + $0x38] sm:$0xff]   ;;  %v248_v5 = vld [vmem:[%s330_s3 + $0x30] sm:$0xff]   ;;  %vm191_vm3 = vcmask 15360  }
   0x2   :  { %v36_v2 = vsel %vm34_vm0, %v22_v1, 0  ;;  %225 = vmatprep.subr.bf16.mxu1 %v257_v0  ;;  %241 = vmatprep.mubr.msk.bf16.mxu1 %vm258_vm1, %v257_v0  ;;  %v21_v4 = vld [vmem:[%s329_s0] sm:$0xf]  ;;  %v249_v6 = vld [vmem:[%s330_s3 + $0x28] sm:$0xff]   ;;  %v251_v8 = vld [vmem:[%s330_s3 + $0x18] sm:$0xff]  }
   0x3   :  { %220 = vmatpush3.bf16.msra.mxu0 %v36_v2  ;;  %226 = vmatpush3.bf16.msra.mxu1 %v247_v3  ;;  %v250_v7 = vld [vmem:[%s330_s3 + $0x20] sm:$0xff]   ;;  %v252_v9 = vld [vmem:[%s330_s3 + $0x10] sm:$0xff]   ;;  %v253_v10 = vld [vmem:[%s330_s3 + $0x8] sm:$0xff]  }
   0x4   :  { %227 = vmatprep.subr.bf16.mxu1 %v257_v0  ;;  %v254_v11 = vld [vmem:[%s330_s3] sm:$0xff]  }
   0x5   :  { %v197_v12 = vld [vmem:[%s331_s2] ss:$0 sm:$0xff] }
   0x6   :  { %222 = vmatmul.mubr.msk.bf16.vlgmr.msra.gmra.mxu0 %vm30_vm2, %v21_v4  ;;  %v199_v20 = vld [vmem:[%s332_s4] ss:$0 sm:$0xff] }
   0x7   :  { %228 = vmatpush3.bf16.msra.mxu1 %v248_v5 }
   0x8   :  { %229 = vmatprep.subr.bf16.mxu1 %v257_v0 }
   0xb   :  { %230 = vmatpush3.bf16.msra.mxu1 %v249_v6 }
   0xc   :  { %231 = vmatprep.subr.bf16.mxu1 %v257_v0 }
   0xf   :  { %232 = vmatpush3.bf16.msra.mxu1 %v250_v7 }
  0x10   :  { %233 = vmatprep.subr.bf16.mxu1 %v257_v0 }
  0x13   :  { %234 = vmatpush3.bf16.msra.mxu1 %v251_v8 }
  0x14   :  { %235 = vmatprep.subr.bf16.mxu1 %v257_v0 }
  0x17   :  { %236 = vmatpush3.bf16.msra.mxu1 %v252_v9 }
  0x18   :  { %237 = vmatprep.subr.bf16.mxu1 %v257_v0 }
  0x1b   :  { %238 = vmatpush3.bf16.msra.mxu1 %v253_v10 }
  0x1c   :  { %239 = vmatprep.subr.bf16.mxu1 %v257_v0 }
  0x1f   :  { %240 = vmatpush3.bf16.msra.mxu1 %v254_v11 }
  0xc6   :  { %v72_v13 = vpop.f32.mrf.mxu0 }
  0xc7   :  { %v73_v14 = vadd.f32 %v197_v12, %v72_v13 }
  0xc8   :  { %v223_v15 = vpop.f32.mrf.mxu0 }
  0xc9   :  { %255 = vtanh.f32 %v73_v14 }
  0xca   :  { %v75_v16 = vpop.f32.mrf.mxu0 }
  0xcc   :  { %v224_v17 = vpop.f32.mrf.mxu0 }
  0xd6   :  { %v256_v18 = vpop.eup %255 }
  0xd7   :  { %v79_v19 = vpack.c.bf16 %v256_v18, %v256_v18 }
  0xd9   :  { %242 = vmatmul.mubr.bf16.vlgmr.msra.gmra.mxu1 %v79_v19 }
 0x199   :  { %v185_v21 = vpop.f32.mrf.mxu1 }
 0x19a   :  { %v186_v22 = vadd.f32 %v199_v20, %v185_v21 }
 0x19b   :  { %v243_v23 = vpop.f32.mrf.mxu1 }
 0x19c   :  { %192 = vst.msk [vmem:[%s333_s5] sm:$0xff] %vm191_vm3, %v186_v22 }
 0x19d   :  { %v188_v24 = vpop.f32.mrf.mxu1 }
 0x19f   :  { %v244_v25 = vpop.f32.mrf.mxu1 }

</bundles_post_ra>
